<compile_context>
chip_gen: v5e
topology: v5e:2x2
jax: 0.10.0
libtpu: 0.0.40
codegen_flags: <defaults>
</compile_context>

<pallas_src>
import functools

import jax
import jax.numpy as jnp
from jax import lax
from jax.experimental import pallas as pl
from jax.experimental.pallas import tpu as pltpu


_LANE_CANDIDATES = (512, 256, 128)   # lane-dense last dim (multiples of 128)
_BLOCK_ROWS_CAP = 2048               # (2048, 512) f32 tile = 4 MiB per input
_VMEM_LIMIT_BYTES = 48 * 1024 * 1024


def _stable_bce(x, t):
    # Numerically stable BCE-with-logits (same formula PyTorch uses):
    #   max(x, 0) - x * t + log(1 + exp(-|x|))
    # NOTE: exp + log1p = 2 EUP pushes per vreg; hidden under HBM DMA on
    # v5e/v6e, and acceptable EUP occupancy on v7x.
    return jnp.maximum(x, 0.0) - x * t + jnp.log1p(jnp.exp(-jnp.abs(x)))


def _num_parallel_cores():
    """2 on 2-TensorCore parts (v7x), else 1 (v5e / v6e / unknown)."""
    try:
        kind = jax.devices()[0].device_kind.lower()
    except Exception:
        return 1
    return 2 if ("v7" in kind or "7x" in kind) else 1


def _block_bce_sum(pred_ref, tgt_ref, block_start, rows, n8, lane, masked):
    """(8, lane) vector of partial BCE sums over this block's 8-row slabs."""

    def body(i, acc):
        r0 = pl.multiple_of(i * 8, 8)
        x = pred_ref[pl.ds(r0, 8), :].astype(jnp.float32)
        t = tgt_ref[pl.ds(r0, 8), :].astype(jnp.float32)
        bce = _stable_bce(x, t)
        if masked:
            # Row-level mask only (every kept row is fully valid), so int32
            # row indices are safe for any realistic tensor size.
            row = block_start + r0 + lax.broadcasted_iota(jnp.int32, bce.shape, 0)
            bce = jnp.where(row < rows, bce, 0.0)
        return acc + bce

    return lax.fori_loop(0, n8, body, jnp.zeros((8, lane), jnp.float32),
                         unroll=min(8, n8))


def _bce_partial_sum_kernel(pred_ref, tgt_ref, out_ref, acc_ref, *,
                            rows, block_rows, lane, chunks):
    c = pl.program_id(0)   # parallel (core) axis
    j = pl.program_id(1)   # reduction axis (last, "arbitrary")

    @pl.when(j == 0)
    def _():
        acc_ref[...] = jnp.zeros_like(acc_ref)

    # Unclamped linear block id -> the rows this block is responsible for.
    # The index_map clamps the *data* index so out-of-range blocks re-read a
    # valid block; the mask below makes their contribution exactly zero.
    g = c * chunks + j
    block_start = g * block_rows
    n8 = block_rows // 8

    fully_valid = block_start + block_rows <= rows

    @pl.when(fully_valid)
    def _():  # hot path: no mask work at all
        acc_ref[...] += _block_bce_sum(pred_ref, tgt_ref, block_start, rows,
                                       n8, lane, masked=False)

    @pl.when(jnp.logical_not(fully_valid))
    def _():  # only the tail / duplicate block(s) pay for the row mask
        acc_ref[...] += _block_bce_sum(pred_ref, tgt_ref, block_start, rows,
                                       n8, lane, masked=True)

    @pl.when(j == pl.num_programs(1) - 1)
    def _():
        out_ref[0] = acc_ref[...]


def _bce_sum_jax(x, t):
    return jnp.sum(_stable_bce(x.astype(jnp.float32), t.astype(jnp.float32)))


def _bce_with_logits_mean(prediction, target):
    """Mean BCE-with-logits over all elements; bulk summed in a Pallas kernel."""
    assert prediction.shape == target.shape
    total = prediction.size

    # Sub-32-bit inputs pack 2x/4x along sublanes -> align rows to 16.
    itemsize = min(jnp.dtype(prediction.dtype).itemsize,
                   jnp.dtype(target.dtype).itemsize)
    align = 8 if itemsize >= 4 else 16

    # Lane-dense last dim; shrink it only if needed so we get >= `align` rows.
    lane = None
    for cand in _LANE_CANDIDATES:
        if total // cand >= align:
            lane = cand
            break

    flat_p = prediction.reshape(-1)
    flat_t = target.reshape(-1)

    if lane is None:
        # Tiny input: a kernel launch would be pure overhead.
        return _bce_sum_jax(flat_p, flat_t) / jnp.float32(total)

    rows = total // lane
    rem = total - rows * lane

    tail_sum = jnp.zeros((), jnp.float32)
    if rem:
        # Ragged tail (< lane elements): summed in plain JAX, negligible.
        tail_sum = _bce_sum_jax(flat_p[rows * lane:], flat_t[rows * lane:])
        # TODO(synk): the prefix slice below may cost one copy of the main
        # slab when total % lane != 0; still far cheaper than padding up to
        # block granularity as before.
        p2 = flat_p[: rows * lane].reshape(rows, lane)
        t2 = flat_t[: rows * lane].reshape(rows, lane)
    else:
        # Common case: pure (zero-copy) reshape, no extra HBM traffic.
        p2 = flat_p.reshape(rows, lane)
        t2 = flat_t.reshape(rows, lane)

    npar = _num_parallel_cores()
    block_rows = min(_BLOCK_ROWS_CAP, (rows // align) * align)  # multiple of align
    nvalid = pl.cdiv(rows, block_rows)      # blocks actually holding data
    chunks = pl.cdiv(nvalid, npar)          # blocks per core

    kernel = functools.partial(
        _bce_partial_sum_kernel,
        rows=rows, block_rows=block_rows, lane=lane, chunks=chunks)

    def in_map(c, j):
        # Clamp so out-of-range blocks re-read the last valid block (their
        # contribution is masked to exactly zero inside the kernel).
        return (jnp.minimum(c * chunks + j, nvalid - 1), 0)

    partials = pl.pallas_call(
        kernel,
        out_shape=jax.ShapeDtypeStruct((npar, 8, lane), jnp.float32),
        grid_spec=pltpu.PrefetchScalarGridSpec(
            num_scalar_prefetch=0,
            grid=(npar, chunks),
            in_specs=[
                pl.BlockSpec((block_rows, lane), in_map),
                pl.BlockSpec((block_rows, lane), in_map),
            ],
            out_specs=pl.BlockSpec((1, 8, lane), lambda c, j: (c, 0, 0)),
            scratch_shapes=[pltpu.VMEM((8, lane), jnp.float32)],
        ),
        compiler_params=pltpu.CompilerParams(
            dimension_semantics=("parallel", "arbitrary"),
            vmem_limit_bytes=_VMEM_LIMIT_BYTES,
        ),
    )(p2, t2)

    # Tiny (npar, 8, lane) final reduce: leave it to XLA.
    return (jnp.sum(partials) + tail_sum) / jnp.float32(total)


class BCELossWithQuant:
    """JAX/Pallas port of taming's BCELossWithQuant (forward only)."""

    def __init__(self, codebook_weight=1.0):
        self.codebook_weight = codebook_weight

    @functools.partial(jax.jit, static_argnums=(0, 4))
    def _compute(self, qloss, target, prediction, split):
        bce_loss = _bce_with_logits_mean(prediction, target)
        loss = bce_loss + self.codebook_weight * qloss
        log = {
            "{}/total_loss".format(split): jnp.mean(loss),
            "{}/bce_loss".format(split): jnp.mean(bce_loss),
            "{}/quant_loss".format(split): jnp.mean(qloss),
        }
        return loss, log

    def __call__(self, qloss, target, prediction, split):
        return self._compute(qloss, target, prediction, split)


if __name__ == "__main__":
    key = jax.random.PRNGKey(0)
    k1, k2, k3 = jax.random.split(key, 3)

    N, C, H, W = 2, 4, 16, 16  # NCHW, matching the PyTorch convention
    prediction = jax.random.normal(k1, (N, C, H, W), dtype=jnp.float32)  # logits
    target = (jax.random.uniform(k2, (N, C, H, W)) > 0.5).astype(jnp.float32)
    qloss = jnp.abs(jax.random.normal(k3, (), dtype=jnp.float32))  # scalar codebook loss

    loss_mod = BCELossWithQuant(codebook_weight=1.0)
    loss, log = loss_mod(qloss, target, prediction, split="train")
    jax.block_until_ready(loss)
    jax.block_until_ready(log)

    # Pure-JAX reference check of the BCE mean + total loss.
    x = prediction.astype(jnp.float32)
    t = target.astype(jnp.float32)
    ref_bce = jnp.mean(jnp.maximum(x, 0.0) - x * t + jnp.log1p(jnp.exp(-jnp.abs(x))))
    ref_loss = ref_bce + 1.0 * qloss
    assert jnp.allclose(loss, ref_loss, rtol=1e-5, atol=1e-5), (loss, ref_loss)
    assert jnp.allclose(log["train/bce_loss"], ref_bce, rtol=1e-5, atol=1e-5)

    print("KERNEL_OK")
</pallas_src>

<mosaic_0001>
module attributes {stable_mosaic.version = 11 : i64} {
  func.func @_bce_partial_sum_kernel(%arg0: i32, %arg1: i32, %arg2: memref<8x256xf32, #tpu.memory_space<vmem>>, %arg3: memref<8x256xf32, #tpu.memory_space<vmem>>, %arg4: memref<1x8x256xf32, #tpu.memory_space<vmem>>, %arg5: memref<8x256xf32, #tpu.memory_space<vmem>>) attributes {dimension_semantics = [#tpu.dimension_semantics<parallel>, #tpu.dimension_semantics<arbitrary>], iteration_bounds = array<i64: 1, 1>, scalar_prefetch = 0 : i64, scratch_operands = 1 : i64, tpu.core_type = #tpu.core_type<tc>, window_params = [{transform_indices = @transform_0, window_bounds = array<i64: 8, 256>}, {transform_indices = @transform_1, window_bounds = array<i64: 8, 256>}, {transform_indices = @transform_2, window_bounds = array<i64: 1, 8, 256>}]} {
    %c0_i32 = arith.constant 0 : i32
    %0 = arith.cmpi eq, %arg1, %c0_i32 : i32
    %1 = arith.extui %0 : i1 to i32
    %c0_i32_0 = arith.constant 0 : i32
    %2 = arith.cmpi ne, %1, %c0_i32_0 : i32
    scf.if %2 {
      %cst = arith.constant 0.000000e+00 : f32
      %16 = vector.broadcast %cst : f32 to vector<8x256xf32>
      %c0 = arith.constant 0 : index
      %c0_7 = arith.constant 0 : index
      %17 = vector.load %arg5[%c0, %c0_7] : memref<8x256xf32, #tpu.memory_space<vmem>>, vector<8x256xf32>
      tpu.vector_store %arg5[%c0, %c0_7], %16 {strides = array<i32>} : memref<8x256xf32, #tpu.memory_space<vmem>>, vector<8x256xf32>,
    } else {
    }
    %c1_i32 = arith.constant 1 : i32
    %3 = arith.muli %arg0, %c1_i32 : i32
    %4 = arith.addi %3, %arg1 : i32
    %c8_i32 = arith.constant 8 : i32
    %5 = arith.muli %4, %c8_i32 : i32
    %c8_i32_1 = arith.constant 8 : i32
    %6 = arith.addi %5, %c8_i32_1 : i32
    %c8_i32_2 = arith.constant 8 : i32
    %7 = arith.cmpi sle, %6, %c8_i32_2 : i32
    %8 = arith.extui %7 : i1 to i32
    %c0_i32_3 = arith.constant 0 : i32
    %9 = arith.cmpi ne, %8, %c0_i32_3 : i32
    scf.if %9 {
      %c0 = arith.constant 0 : index
      %c0_7 = arith.constant 0 : index
      %16 = vector.load %arg5[%c0, %c0_7] : memref<8x256xf32, #tpu.memory_space<vmem>>, vector<8x256xf32>
      %cst = arith.constant 0.000000e+00 : f32
      %17 = vector.broadcast %cst : f32 to vector<8x256xf32>
      %c0_i32_8 = arith.constant 0 : i32
      %c8_i32_9 = arith.constant 8 : i32
      %18 = arith.muli %c0_i32_8, %c8_i32_9 : i32
      %19 = tpu.assume_multiple %18, 8 : i32
      %20 = arith.index_cast %19 : i32 to index
      %c0_10 = arith.constant 0 : index
      %21 = vector.load %arg2[%20, %c0_10] : memref<8x256xf32, #tpu.memory_space<vmem>>, vector<8x256xf32>
      %22 = arith.index_cast %19 : i32 to index
      %c0_11 = arith.constant 0 : index
      %23 = vector.load %arg3[%22, %c0_11] : memref<8x256xf32, #tpu.memory_space<vmem>>, vector<8x256xf32>
      %cst_12 = arith.constant 0.000000e+00 : f32
      %24 = vector.broadcast %cst_12 : f32 to vector<8x256xf32>
      %25 = arith.maximumf %21, %24 : vector<8x256xf32>
      %26 = arith.mulf %21, %23 : vector<8x256xf32>
      %27 = arith.subf %25, %26 : vector<8x256xf32>
      %28 = math.absf %21 : vector<8x256xf32>
      %cst_13 = arith.constant 0.000000e+00 : f32
      %29 = vector.broadcast %cst_13 : f32 to vector<8x256xf32>
      %30 = arith.subf %29, %28 : vector<8x256xf32>
      %31 = math.exp %30 : vector<8x256xf32>
      %32 = math.log1p %31 : vector<8x256xf32>
      %33 = arith.addf %27, %32 : vector<8x256xf32>
      %34 = arith.addf %17, %33 : vector<8x256xf32>
      %c1_i32_14 = arith.constant 1 : i32
      %35 = arith.addf %16, %34 : vector<8x256xf32>
      %c0_15 = arith.constant 0 : index
      %c0_16 = arith.constant 0 : index
      %36 = vector.load %arg5[%c0_15, %c0_16] : memref<8x256xf32, #tpu.memory_space<vmem>>, vector<8x256xf32>
      tpu.vector_store %arg5[%c0_15, %c0_16], %35 {strides = array<i32>} : memref<8x256xf32, #tpu.memory_space<vmem>>, vector<8x256xf32>,
    } else {
    }
    %true = arith.constant true
    %10 = arith.xori %7, %true : i1
    %11 = arith.extui %10 : i1 to i32
    %c0_i32_4 = arith.constant 0 : i32
    %12 = arith.cmpi ne, %11, %c0_i32_4 : i32
    scf.if %12 {
      %c0 = arith.constant 0 : index
      %c0_7 = arith.constant 0 : index
      %16 = vector.load %arg5[%c0, %c0_7] : memref<8x256xf32, #tpu.memory_space<vmem>>, vector<8x256xf32>
      %cst = arith.constant 0.000000e+00 : f32
      %17 = vector.broadcast %cst : f32 to vector<8x256xf32>
      %c0_i32_8 = arith.constant 0 : i32
      %c8_i32_9 = arith.constant 8 : i32
      %18 = arith.muli %c0_i32_8, %c8_i32_9 : i32
      %19 = tpu.assume_multiple %18, 8 : i32
      %20 = arith.index_cast %19 : i32 to index
      %c0_10 = arith.constant 0 : index
      %21 = vector.load %arg2[%20, %c0_10] : memref<8x256xf32, #tpu.memory_space<vmem>>, vector<8x256xf32>
      %22 = arith.index_cast %19 : i32 to index
      %c0_11 = arith.constant 0 : index
      %23 = vector.load %arg3[%22, %c0_11] : memref<8x256xf32, #tpu.memory_space<vmem>>, vector<8x256xf32>
      %cst_12 = arith.constant 0.000000e+00 : f32
      %24 = vector.broadcast %cst_12 : f32 to vector<8x256xf32>
      %25 = arith.maximumf %21, %24 : vector<8x256xf32>
      %26 = arith.mulf %21, %23 : vector<8x256xf32>
      %27 = arith.subf %25, %26 : vector<8x256xf32>
      %28 = math.absf %21 : vector<8x256xf32>
      %cst_13 = arith.constant 0.000000e+00 : f32
      %29 = vector.broadcast %cst_13 : f32 to vector<8x256xf32>
      %30 = arith.subf %29, %28 : vector<8x256xf32>
      %31 = math.exp %30 : vector<8x256xf32>
      %32 = math.log1p %31 : vector<8x256xf32>
      %33 = arith.addf %27, %32 : vector<8x256xf32>
      %34 = arith.addi %5, %19 : i32
      %35 = tpu.iota {dimensions = array<i32: 0>} : vector<8x256xi32>
      %36 = vector.broadcast %34 : i32 to vector<8x256xi32>
      %37 = arith.addi %36, %35 : vector<8x256xi32>
      %c8_i32_14 = arith.constant 8 : i32
      %38 = vector.broadcast %c8_i32_14 : i32 to vector<8x256xi32>
      %39 = arith.cmpi slt, %37, %38 : vector<8x256xi32>
      %cst_15 = arith.constant 0.000000e+00 : f32
      %40 = vector.broadcast %cst_15 : f32 to vector<8x256xf32>
      %41 = arith.select %39, %33, %40 : vector<8x256xi1>, vector<8x256xf32>
      %42 = arith.addf %17, %41 : vector<8x256xf32>
      %c1_i32_16 = arith.constant 1 : i32
      %43 = arith.addf %16, %42 : vector<8x256xf32>
      %c0_17 = arith.constant 0 : index
      %c0_18 = arith.constant 0 : index
      %44 = vector.load %arg5[%c0_17, %c0_18] : memref<8x256xf32, #tpu.memory_space<vmem>>, vector<8x256xf32>
      tpu.vector_store %arg5[%c0_17, %c0_18], %43 {strides = array<i32>} : memref<8x256xf32, #tpu.memory_space<vmem>>, vector<8x256xf32>,
    } else {
    }
    %c0_i32_5 = arith.constant 0 : i32
    %13 = arith.cmpi eq, %arg1, %c0_i32_5 : i32
    %14 = arith.extui %13 : i1 to i32
    %c0_i32_6 = arith.constant 0 : i32
    %15 = arith.cmpi ne, %14, %c0_i32_6 : i32
    scf.if %15 {
      %c0 = arith.constant 0 : index
      %c0_7 = arith.constant 0 : index
      %16 = vector.load %arg5[%c0, %c0_7] : memref<8x256xf32, #tpu.memory_space<vmem>>, vector<8x256xf32>
      %c0_8 = arith.constant 0 : index
      %c0_9 = arith.constant 0 : index
      %c0_10 = arith.constant 0 : index
      %17 = vector.load %arg4[%c0_8, %c0_9, %c0_10] : memref<1x8x256xf32, #tpu.memory_space<vmem>>, vector<1x8x256xf32>
      %18 = vector.shape_cast %17 : vector<1x8x256xf32> to vector<8x256xf32>
      %19 = vector.shape_cast %16 : vector<8x256xf32> to vector<1x8x256xf32>
      tpu.vector_store %arg4[%c0_8, %c0_9, %c0_10], %19 {strides = array<i32>} : memref<1x8x256xf32, #tpu.memory_space<vmem>>, vector<1x8x256xf32>,
    } else {
    }
    return
  }
  func.func @transform_0(%arg0: i32, %arg1: i32) -> (i32, i32) {
    %c1_i32 = arith.constant 1 : i32
    %0 = arith.muli %arg0, %c1_i32 : i32
    %1 = arith.addi %0, %arg1 : i32
    %c0_i32 = arith.constant 0 : i32
    %2 = arith.minsi %1, %c0_i32 : i32
    %c0_i32_0 = arith.constant 0 : i32
    %c0_i32_1 = arith.constant 0 : i32
    return %2, %c0_i32_0 : i32, i32
  }
  func.func @transform_1(%arg0: i32, %arg1: i32) -> (i32, i32) {
    %c1_i32 = arith.constant 1 : i32
    %0 = arith.muli %arg0, %c1_i32 : i32
    %1 = arith.addi %0, %arg1 : i32
    %c0_i32 = arith.constant 0 : i32
    %2 = arith.minsi %1, %c0_i32 : i32
    %c0_i32_0 = arith.constant 0 : i32
    %c0_i32_1 = arith.constant 0 : i32
    return %2, %c0_i32_0 : i32, i32
  }
  func.func @transform_2(%arg0: i32, %arg1: i32) -> (i32, i32, i32) {
    %c0_i32 = arith.constant 0 : i32
    %c0_i32_0 = arith.constant 0 : i32
    %c0_i32_1 = arith.constant 0 : i32
    return %arg0, %c0_i32, %c0_i32_0 : i32, i32, i32
  }
}

</mosaic_0001>

<bundles_post_ra>
// kernel: _compute.1
= control target key start
LH: loop header
LB: loop body
LE: loop exit
PB: predicated region body
PF: predicated region fallthrough
CT: control target
= control target key end

     0   :  { %s262_s0 = inlined_call_operand.vmem [shape: f32[8,256], index: 0, kind: input, shape index: {}]   ;;  %s263_s1 = inlined_call_operand.vmem [shape: f32[8,256], index: 1, kind: input, shape index: {}]   ;;  %s264_s2 = inlined_call_operand.vmem [shape: f32[1,8,256], index: 2, kind: output, shape index: {}]  }
   0x1   :  { %v89_v0 = vld [vmem:[%s262_s0] sm:$0xff]  ;;  %v90_v1 = vld [vmem:[%s262_s0 + $0x8] sm:$0xff] }
   0x2   :  { %v101_v2 = vand.u32 2147483647, %v89_v0  ;;  %v102_v3 = vand.u32 2147483647, %v90_v1  ;;  %v93_v12 = vld [vmem:[%s263_s1] sm:$0xff]  ;;  %v94_v15 = vld [vmem:[%s263_s1 + $0x8] sm:$0xff] }
   0x3   :  { %v95_v17 = vmax.f32 %v89_v0, 0.0  ;;  %v97_v18 = vmul.f32 %v93_v12, %v89_v0  ;;  %v96_v21 = vmax.f32 %v90_v1, 0.0  ;;  %v98_v22 = vmul.f32 %v94_v15, %v90_v1 }
   0x4   :  { %v103_v4 = vsub.f32 0.0, %v101_v2  ;;  %v104_v5 = vsub.f32 0.0, %v102_v3 }
   0x5   :  { %v99_v26 = vsub.f32 %v95_v17, %v97_v18  ;;  %v100_v30 = vsub.f32 %v96_v21, %v98_v22 }
   0x6   :  { %v105_v6 = vmul.f32 1.442695, %v103_v4  ;;  %v107_v7 = vmul.f32 1.442695, %v104_v5 }
   0x8   :  { %221 = vpow2.f32 %v105_v6 }
   0x9   :  { %223 = vpow2.f32 %v107_v7 }
   0xe   :  { %v222_v8 = vpop.eup %221 }
   0xf   :  { %v224_v9 = vpop.eup %223  ;;  %v109_v10 = vadd.f32 1.0, %v222_v8  ;;  %v112_v11 = vmul.f32 -0.5, %v222_v8  ;;  %v115_v19 = vand.u32 2147483647, %v222_v8 }
  0x10   :  { %v118_v13 = vadd.f32 1.0, %v224_v9  ;;  %v121_v14 = vmul.f32 -0.5, %v224_v9  ;;  %v124_v23 = vand.u32 2147483647, %v224_v9 }
  0x11   :  { %225 = vlog2.f32 %v109_v10  ;;  %v113_v16 = vadd.f32 1.0, %v112_v11  ;;  %vm116_vm0 = vcmp.lt.f32.partialorder %v115_v19, 0.0004427343 }
  0x12   :  { %227 = vlog2.f32 %v118_v13  ;;  %v122_v20 = vadd.f32 1.0, %v121_v14  ;;  %vm125_vm1 = vcmp.lt.f32.partialorder %v124_v23, 0.0004427343 }
  0x13   :  { %v114_v24 = vmul.f32 %v222_v8, %v113_v16 }
  0x14   :  { %v123_v27 = vmul.f32 %v224_v9, %v122_v20 }
  0x17   :  { %v226_v25 = vpop.eup %225 }
  0x18   :  { %v228_v28 = vpop.eup %227  ;;  %v111_v29 = vmul.f32 0.6931472, %v226_v25 }
  0x19   :  { %v120_v31 = vmul.f32 0.6931472, %v228_v28 }
  0x1a   :  { %v117_v32 = vsel %vm116_vm0, %v114_v24, %v111_v29 }
  0x1b   :  { %v127_v33 = vadd.f32 %v117_v32, %v99_v26  ;;  %v126_v34 = vsel %vm125_vm1, %v123_v27, %v120_v31 }
  0x1c   :  { %v128_v35 = vadd.f32 %v126_v34, %v100_v30 }
  0x1d   :  { %203 = vst [vmem:[%s264_s2] sm:$0xff] %v127_v33 }
  0x1e   :  { %204 = vst [vmem:[%s264_s2 + $0x8] sm:$0xff] %v128_v35 }

</bundles_post_ra>
